<compile_context>
chip_gen: v7x
topology: tpu7x:2x2x1
jax: 0.10.0
libtpu: 0.0.40
codegen_flags: <defaults>
</compile_context>

<pallas_src>
import functools

import jax
import jax.numpy as jnp
from jax.experimental import pallas as pl
from jax.experimental.pallas import tpu as pltpu

_BN_EPS = 1e-5
_LANE = 128
_SUBLANE_BF16 = 16


def _round_up(n, m):
    return ((n + m - 1) // m) * m


def _vmem_spec():
    return pl.BlockSpec(memory_space=pltpu.MemorySpace.VMEM)


def _any_spec():
    # raw HBM ref, no auto-DMA -> we prefetch it manually inside the kernel
    return pl.BlockSpec(memory_space=pl.ANY)


def _use_bf16_elementwise():
    """bf16 VALU exists on v6e / v7x; keep f32 elementwise on v5e and older."""
    try:
        kind = jax.devices()[0].device_kind.lower()
    except Exception:
        return False
    return ("v6" in kind) or ("v7" in kind)


# ---------------------------------------------------------------------------
# Fused kernel: entire generator forward in one pallas_call
# ---------------------------------------------------------------------------
def _generator_fused_kernel(x_ref,
                            w1_ref, g1_ref, be1_ref,
                            w2_hbm, g2_ref, be2_ref,
                            w3_hbm, g3_ref, be3_ref,
                            w4_hbm, g4_ref, be4_ref,
                            w5_hbm, b5_ref,
                            o_ref,
                            w2_buf, w3_buf, w4_buf, w5_buf, dma_sem,
                            *, n_real, ew_bf16):
    """sigmoid(W5 . relu(bn(W4 . relu(bn(... relu(bn(W1 . x)) ...)))) + b5)."""
    n_pad = x_ref.shape[0]
    inv_n = 1.0 / float(n_real)

    # Kick off HBM->VMEM prefetch of layer 2..5 weights; they overlap the
    # compute of layers 1..4 (DMA fully hidden except possibly the first wait).
    cp2 = pltpu.make_async_copy(w2_hbm, w2_buf, dma_sem.at[0]); cp2.start()
    cp3 = pltpu.make_async_copy(w3_hbm, w3_buf, dma_sem.at[1]); cp3.start()
    cp4 = pltpu.make_async_copy(w4_hbm, w4_buf, dma_sem.at[2]); cp4.start()
    cp5 = pltpu.make_async_copy(w5_hbm, w5_buf, dma_sem.at[3]); cp5.start()

    # Row mask so batch-padding rows never contaminate BatchNorm statistics.
    if n_pad != n_real:
        row_ids = jax.lax.broadcasted_iota(jnp.int32, (n_pad, 1), 0)
        row_mask = row_ids < n_real
    else:
        row_mask = None

    def bn_block(x_bf16, w_bf16, g_ref, be_ref):
        # Linear.  Bias is dropped: bias before BatchNorm is a no-op because
        # the mean subtraction cancels it exactly (training mode).
        y = jnp.dot(x_bf16, w_bf16, preferred_element_type=jnp.float32)

        # BatchNorm1d, training mode: per-feature batch stats, biased variance.
        # Padded rows are exactly zero, so sums over n_pad rows == sums over
        # the real batch; divide by n_real for exact full-batch statistics.
        # NOTE: var = E[y^2] - mean^2 (single pass); fine at these magnitudes.
        mean = jnp.sum(y, axis=0, keepdims=True) * inv_n          # [1, Dout]
        mean_sq = jnp.sum(y * y, axis=0, keepdims=True) * inv_n   # [1, Dout]
        var = mean_sq - mean * mean

        # Fold the learnable affine into a single scale/shift per feature.
        scale = g_ref[...] * jax.lax.rsqrt(var + _BN_EPS)          # f32
        shift = be_ref[...] - mean * scale                          # f32

        if ew_bf16:
            # v6e/v7x: do the affine + ReLU in bf16 (packed VALU).
            act = jnp.maximum(
                x_bf16.dtype.type(0) if False else
                y.astype(jnp.bfloat16) * scale.astype(jnp.bfloat16)
                + shift.astype(jnp.bfloat16),
                0.0)
        else:
            # v5e and older: keep elementwise math in f32.
            act = jnp.maximum(y * scale + shift, 0.0).astype(jnp.bfloat16)

        if row_mask is not None:
            # Re-zero padded rows so the next layer's BN sums stay exact.
            act = jnp.where(row_mask, act, 0.0)
        return act

    h = bn_block(x_ref[...], w1_ref[...], g1_ref, be1_ref)
    cp2.wait()
    h = bn_block(h, w2_buf[...], g2_ref, be2_ref)
    cp3.wait()
    h = bn_block(h, w3_buf[...], g3_ref, be3_ref)
    cp4.wait()
    h = bn_block(h, w4_buf[...], g4_ref, be4_ref)
    cp5.wait()

    # Final Linear (+ bias, no BN) -> Sigmoid (EUP exp + approx reciprocal).
    y = jnp.dot(h, w5_buf[...], preferred_element_type=jnp.float32) + b5_ref[...]
    sig = pl.reciprocal(1.0 + jnp.exp(-y), approx=True)
    o_ref[...] = sig.astype(jnp.bfloat16)        # bf16 writeback (lane-dense)


# ---------------------------------------------------------------------------
# Parameter construction (PyTorch-default init) and packing for the kernel
# ---------------------------------------------------------------------------
def init_generator_params(key, z_dim=10, im_dim=784, hidden_dim=128):
    """Mirrors PyTorch defaults:
    Linear: W, b ~ U(-1/sqrt(fan_in), 1/sqrt(fan_in)) (W stored [in, out]);
    BatchNorm1d: gamma = 1, beta = 0."""
    dims = [z_dim, hidden_dim, hidden_dim * 2, hidden_dim * 4, hidden_dim * 8, im_dim]
    params = []
    for i in range(len(dims) - 1):
        din, dout = dims[i], dims[i + 1]
        key, kw, kb = jax.random.split(key, 3)
        bound = 1.0 / jnp.sqrt(jnp.float32(din))
        w = jax.random.uniform(kw, (din, dout), jnp.float32, -bound, bound)
        b = jax.random.uniform(kb, (1, dout), jnp.float32, -bound, bound)
        if i < len(dims) - 2:
            gamma = jnp.ones((1, dout), jnp.float32)
            beta = jnp.zeros((1, dout), jnp.float32)
            params.append(("block", w, b, gamma, beta))
        else:
            params.append(("final", w, b))
    return params


def pack_generator_params(params):
    """Pad every feature dim to a multiple of 128, cast weights to bf16,
    drop the (no-op) biases of the BN blocks."""
    packed = []
    for p in params:
        if p[0] == "block":
            _, w, _b, g, be = p          # bias intentionally unused (BN no-op)
            din, dout = w.shape
            dinp, doutp = _round_up(din, _LANE), _round_up(dout, _LANE)
            wp = jnp.zeros((dinp, doutp), jnp.bfloat16).at[:din, :dout].set(
                w.astype(jnp.bfloat16))
            gp = jnp.zeros((1, doutp), jnp.float32).at[:, :dout].set(g)
            bep = jnp.zeros((1, doutp), jnp.float32).at[:, :dout].set(be)
            packed.extend([wp, gp, bep])
        else:
            _, w, b = p
            din, dout = w.shape
            dinp, doutp = _round_up(din, _LANE), _round_up(dout, _LANE)
            wp = jnp.zeros((dinp, doutp), jnp.bfloat16).at[:din, :dout].set(
                w.astype(jnp.bfloat16))
            bp = jnp.zeros((1, doutp), jnp.float32).at[:, :dout].set(b)
            packed.extend([wp, bp])
    return packed


# ---------------------------------------------------------------------------
# Forward pass wrapper
# ---------------------------------------------------------------------------
@functools.partial(jax.jit, static_argnums=(2,))
def generator_forward(noise, packed_params, im_dim):
    """noise: [N, z_dim] float32 -> images [N, im_dim] in (0, 1)."""
    n, z_dim = noise.shape
    n_pad = _round_up(n, _SUBLANE_BF16)          # bf16 sublane pack
    k_pad = _round_up(z_dim, _LANE)
    out_pad = packed_params[-1].shape[1]         # padded im_dim (multiple of 128)

    # Zero-pad noise rows (to a 16-multiple batch) and the feature axis
    # (to a lane-aligned K); cast to bf16 for the MXU.
    x = jnp.zeros((n_pad, k_pad), jnp.bfloat16).at[:n, :z_dim].set(
        noise.astype(jnp.bfloat16))

    # packed layout: [w1,g1,be1, w2,g2,be2, w3,g3,be3, w4,g4,be4, w5,b5]
    w2, w3, w4, w5 = (packed_params[3], packed_params[6],
                      packed_params[9], packed_params[12])

    # Explicit scoped-VMEM budget: params (w2..w5 live once, in scratch) +
    # widest-layer f32 pre-activation / temporaries + bf16 activations + out.
    param_bytes = sum(int(p.size) * p.dtype.itemsize for p in packed_params)
    widest = max(int(p.shape[-1]) for p in packed_params)
    act_bytes = n_pad * widest * (4 + 4 + 2) + n_pad * (k_pad + out_pad) * 2
    vmem_limit = int(max(32 << 20, 2 * (param_bytes + act_bytes)))

    kernel = functools.partial(_generator_fused_kernel,
                               n_real=n, ew_bf16=_use_bf16_elementwise())

    in_specs = [
        _vmem_spec(),                                   # x
        _vmem_spec(), _vmem_spec(), _vmem_spec(),       # w1, g1, be1
        _any_spec(),  _vmem_spec(), _vmem_spec(),       # w2 (HBM), g2, be2
        _any_spec(),  _vmem_spec(), _vmem_spec(),       # w3 (HBM), g3, be3
        _any_spec(),  _vmem_spec(), _vmem_spec(),       # w4 (HBM), g4, be4
        _any_spec(),  _vmem_spec(),                     # w5 (HBM), b5
    ]

    out_padded = pl.pallas_call(
        kernel,
        out_shape=jax.ShapeDtypeStruct((n_pad, out_pad), jnp.bfloat16),
        in_specs=in_specs,
        out_specs=_vmem_spec(),
        scratch_shapes=[
            pltpu.VMEM(w2.shape, jnp.bfloat16),
            pltpu.VMEM(w3.shape, jnp.bfloat16),
            pltpu.VMEM(w4.shape, jnp.bfloat16),
            pltpu.VMEM(w5.shape, jnp.bfloat16),
            pltpu.SemaphoreType.DMA((4,)),
        ],
        compiler_params=pltpu.CompilerParams(vmem_limit_bytes=vmem_limit),
    )(x, *packed_params)

    return out_padded[:n, :im_dim].astype(jnp.float32)


# ---------------------------------------------------------------------------
# Pure-JAX reference (full PyTorch semantics, incl. BN-block biases, with the
# same bf16 weight/activation quantization as the kernel)
# ---------------------------------------------------------------------------
def generator_ref(noise, params):
    x = noise.astype(jnp.bfloat16)
    for p in params:
        if p[0] == "block":
            _, w, b, g, be = p
            y = jnp.dot(x, w.astype(jnp.bfloat16),
                        preferred_element_type=jnp.float32) + b
            mean = jnp.mean(y, axis=0, keepdims=True)
            var = jnp.mean((y - mean) ** 2, axis=0, keepdims=True)
            act = jnp.maximum(
                (y - mean) * jax.lax.rsqrt(var + _BN_EPS) * g + be, 0.0)
            x = act.astype(jnp.bfloat16)
        else:
            _, w, b = p
            y = jnp.dot(x, w.astype(jnp.bfloat16),
                        preferred_element_type=jnp.float32) + b
            x = jax.nn.sigmoid(y)
    return x


if __name__ == "__main__":
    # Small shapes consistent with the module's forward: noise is [N, z_dim].
    # TODO(synk): only training-mode BatchNorm (batch statistics) is modelled;
    # eval-mode running stats are not part of this forward pass.
    Z_DIM, IM_DIM, HIDDEN_DIM = 10, 64, 32
    BATCH = 8

    key = jax.random.PRNGKey(0)
    key_params, key_noise = jax.random.split(key)

    params = init_generator_params(key_params, z_dim=Z_DIM, im_dim=IM_DIM,
                                   hidden_dim=HIDDEN_DIM)
    packed = pack_generator_params(params)

    noise = jax.random.normal(key_noise, (BATCH, Z_DIM), jnp.float32)

    out = generator_forward(noise, packed, IM_DIM)
    out = jax.block_until_ready(out)

    ref = generator_ref(noise, params)
    assert out.shape == (BATCH, IM_DIM)
    assert bool(jnp.all((out >= 0.0) & (out <= 1.0)))
    max_err = float(jnp.max(jnp.abs(out - ref)))
    assert max_err < 3e-2, max_err

    print("KERNEL_OK")
</pallas_src>

<mosaic_0001>
module attributes {stable_mosaic.version = 11 : i64} {
  func.func @_generator_fused_kernel(%arg0: memref<16x128xbf16, #tpu.memory_space<vmem>>, %arg1: memref<128x128xbf16, #tpu.memory_space<vmem>>, %arg2: memref<1x128xf32, #tpu.memory_space<vmem>>, %arg3: memref<1x128xf32, #tpu.memory_space<vmem>>, %arg4: memref<128x128xbf16, #tpu.memory_space<any>>, %arg5: memref<1x128xf32, #tpu.memory_space<vmem>>, %arg6: memref<1x128xf32, #tpu.memory_space<vmem>>, %arg7: memref<128x128xbf16, #tpu.memory_space<any>>, %arg8: memref<1x128xf32, #tpu.memory_space<vmem>>, %arg9: memref<1x128xf32, #tpu.memory_space<vmem>>, %arg10: memref<128x256xbf16, #tpu.memory_space<any>>, %arg11: memref<1x256xf32, #tpu.memory_space<vmem>>, %arg12: memref<1x256xf32, #tpu.memory_space<vmem>>, %arg13: memref<256x128xbf16, #tpu.memory_space<any>>, %arg14: memref<1x128xf32, #tpu.memory_space<vmem>>, %arg15: memref<16x128xbf16, #tpu.memory_space<vmem>>, %arg16: memref<128x128xbf16, #tpu.memory_space<vmem>>, %arg17: memref<128x128xbf16, #tpu.memory_space<vmem>>, %arg18: memref<128x256xbf16, #tpu.memory_space<vmem>>, %arg19: memref<256x128xbf16, #tpu.memory_space<vmem>>, %arg20: memref<4x!tpu.dma_semaphore, #tpu.memory_space<semaphore_mem>>) attributes {dimension_semantics = [], scalar_prefetch = 0 : i64, scratch_operands = 5 : i64, tpu.core_type = #tpu.core_type<tc>} {
    %c0_i32 = arith.constant 0 : i32
    %0 = tpu.memref_slice %arg20[%c0_i32] : memref<4x!tpu.dma_semaphore, #tpu.memory_space<semaphore_mem>> -> memref<1x!tpu.dma_semaphore, #tpu.memory_space<semaphore_mem>>
    %1 = tpu.memref_squeeze %0 : memref<1x!tpu.dma_semaphore, #tpu.memory_space<semaphore_mem>> -> memref<!tpu.dma_semaphore, #tpu.memory_space<semaphore_mem>>
    tpu.enqueue_dma source(%arg4 : memref<128x128xbf16, #tpu.memory_space<any>>) target(%arg16 : memref<128x128xbf16, #tpu.memory_space<vmem>>) target_semaphore(%1 : memref<!tpu.dma_semaphore, #tpu.memory_space<semaphore_mem>>)
    %c1_i32 = arith.constant 1 : i32
    %2 = tpu.memref_slice %arg20[%c1_i32] : memref<4x!tpu.dma_semaphore, #tpu.memory_space<semaphore_mem>> -> memref<1x!tpu.dma_semaphore, #tpu.memory_space<semaphore_mem>>
    %3 = tpu.memref_squeeze %2 : memref<1x!tpu.dma_semaphore, #tpu.memory_space<semaphore_mem>> -> memref<!tpu.dma_semaphore, #tpu.memory_space<semaphore_mem>>
    tpu.enqueue_dma source(%arg7 : memref<128x128xbf16, #tpu.memory_space<any>>) target(%arg17 : memref<128x128xbf16, #tpu.memory_space<vmem>>) target_semaphore(%3 : memref<!tpu.dma_semaphore, #tpu.memory_space<semaphore_mem>>)
    %c2_i32 = arith.constant 2 : i32
    %4 = tpu.memref_slice %arg20[%c2_i32] : memref<4x!tpu.dma_semaphore, #tpu.memory_space<semaphore_mem>> -> memref<1x!tpu.dma_semaphore, #tpu.memory_space<semaphore_mem>>
    %5 = tpu.memref_squeeze %4 : memref<1x!tpu.dma_semaphore, #tpu.memory_space<semaphore_mem>> -> memref<!tpu.dma_semaphore, #tpu.memory_space<semaphore_mem>>
    tpu.enqueue_dma source(%arg10 : memref<128x256xbf16, #tpu.memory_space<any>>) target(%arg18 : memref<128x256xbf16, #tpu.memory_space<vmem>>) target_semaphore(%5 : memref<!tpu.dma_semaphore, #tpu.memory_space<semaphore_mem>>)
    %c3_i32 = arith.constant 3 : i32
    %6 = tpu.memref_slice %arg20[%c3_i32] : memref<4x!tpu.dma_semaphore, #tpu.memory_space<semaphore_mem>> -> memref<1x!tpu.dma_semaphore, #tpu.memory_space<semaphore_mem>>
    %7 = tpu.memref_squeeze %6 : memref<1x!tpu.dma_semaphore, #tpu.memory_space<semaphore_mem>> -> memref<!tpu.dma_semaphore, #tpu.memory_space<semaphore_mem>>
    tpu.enqueue_dma source(%arg13 : memref<256x128xbf16, #tpu.memory_space<any>>) target(%arg19 : memref<256x128xbf16, #tpu.memory_space<vmem>>) target_semaphore(%7 : memref<!tpu.dma_semaphore, #tpu.memory_space<semaphore_mem>>)
    %8 = tpu.iota {dimensions = array<i32: 0>} : vector<16x1xi32>
    %c8_i32 = arith.constant 8 : i32
    %9 = vector.broadcast %c8_i32 : i32 to vector<16x1xi32>
    %10 = arith.cmpi slt, %8, %9 : vector<16x1xi32>
    %c0 = arith.constant 0 : index
    %c0_0 = arith.constant 0 : index
    %11 = vector.load %arg0[%c0, %c0_0] : memref<16x128xbf16, #tpu.memory_space<vmem>>, vector<16x128xbf16>
    %c0_1 = arith.constant 0 : index
    %c0_2 = arith.constant 0 : index
    %12 = vector.load %arg1[%c0_1, %c0_2] : memref<128x128xbf16, #tpu.memory_space<vmem>>, vector<128x128xbf16>
    %cst = arith.constant dense<0.000000e+00> : vector<16x128xf32>
    %13 = tpu.matmul %11, %12, %cst {dimension_numbers = #tpu.dot_dimension_numbers<[1], [0], [0], [1], [0, 0, 1, 1], [], []>} : vector<16x128xbf16>, vector<128x128xbf16>, vector<16x128xf32> -> vector<16x128xf32>
    %cst_3 = arith.constant dense<0.000000e+00> : vector<128xf32>
    %14 = vector.multi_reduction <add>, %13, %cst_3 [0] : vector<16x128xf32> to vector<128xf32>
    %15 = vector.shape_cast %14 : vector<128xf32> to vector<1x128xf32>
    %cst_4 = arith.constant 1.250000e-01 : f32
    %16 = vector.broadcast %cst_4 : f32 to vector<1x128xf32>
    %17 = arith.mulf %15, %16 : vector<1x128xf32>
    %18 = arith.mulf %13, %13 : vector<16x128xf32>
    %cst_5 = arith.constant dense<0.000000e+00> : vector<128xf32>
    %19 = vector.multi_reduction <add>, %18, %cst_5 [0] : vector<16x128xf32> to vector<128xf32>
    %20 = vector.shape_cast %19 : vector<128xf32> to vector<1x128xf32>
    %cst_6 = arith.constant 1.250000e-01 : f32
    %21 = vector.broadcast %cst_6 : f32 to vector<1x128xf32>
    %22 = arith.mulf %20, %21 : vector<1x128xf32>
    %23 = arith.mulf %17, %17 : vector<1x128xf32>
    %24 = arith.subf %22, %23 : vector<1x128xf32>
    %c0_7 = arith.constant 0 : index
    %c0_8 = arith.constant 0 : index
    %25 = vector.load %arg2[%c0_7, %c0_8] : memref<1x128xf32, #tpu.memory_space<vmem>>, vector<1x128xf32>
    %cst_9 = arith.constant 9.99999974E-6 : f32
    %26 = vector.broadcast %cst_9 : f32 to vector<1x128xf32>
    %27 = arith.addf %24, %26 : vector<1x128xf32>
    %28 = math.rsqrt %27 : vector<1x128xf32>
    %29 = arith.mulf %25, %28 : vector<1x128xf32>
    %c0_10 = arith.constant 0 : index
    %c0_11 = arith.constant 0 : index
    %30 = vector.load %arg3[%c0_10, %c0_11] : memref<1x128xf32, #tpu.memory_space<vmem>>, vector<1x128xf32>
    %31 = arith.mulf %17, %29 : vector<1x128xf32>
    %32 = arith.subf %30, %31 : vector<1x128xf32>
    %33 = vector.broadcast %29 : vector<1x128xf32> to vector<16x128xf32>
    %34 = arith.mulf %13, %33 : vector<16x128xf32>
    %35 = vector.broadcast %32 : vector<1x128xf32> to vector<16x128xf32>
    %36 = arith.addf %34, %35 : vector<16x128xf32>
    %cst_12 = arith.constant 0.000000e+00 : f32
    %37 = vector.broadcast %cst_12 : f32 to vector<16x128xf32>
    %38 = arith.maximumf %36, %37 : vector<16x128xf32>
    %39 = arith.truncf %38 : vector<16x128xf32> to vector<16x128xbf16>
    %cst_13 = arith.constant 0.000000e+00 : f32
    %40 = arith.truncf %cst_13 : f32 to bf16
    %41 = vector.shape_cast %10 : vector<16x1xi1> to vector<16x1xi1>
    %42 = vector.broadcast %41 : vector<16x1xi1> to vector<16x128xi1>
    %43 = vector.broadcast %40 : bf16 to vector<16x128xbf16>
    %44 = arith.select %42, %39, %43 : vector<16x128xi1>, vector<16x128xbf16>
    %c0_i32_14 = arith.constant 0 : i32
    %45 = tpu.memref_slice %arg20[%c0_i32_14] : memref<4x!tpu.dma_semaphore, #tpu.memory_space<semaphore_mem>> -> memref<1x!tpu.dma_semaphore, #tpu.memory_space<semaphore_mem>>
    %46 = tpu.memref_squeeze %45 : memref<1x!tpu.dma_semaphore, #tpu.memory_space<semaphore_mem>> -> memref<!tpu.dma_semaphore, #tpu.memory_space<semaphore_mem>>
    tpu.wait_dma2 semaphore(%46 : memref<!tpu.dma_semaphore, #tpu.memory_space<semaphore_mem>>) src(%arg4 : memref<128x128xbf16, #tpu.memory_space<any>>) dst(%arg16 : memref<128x128xbf16, #tpu.memory_space<vmem>>)
    %c0_15 = arith.constant 0 : index
    %c0_16 = arith.constant 0 : index
    %47 = vector.load %arg16[%c0_15, %c0_16] : memref<128x128xbf16, #tpu.memory_space<vmem>>, vector<128x128xbf16>
    %cst_17 = arith.constant dense<0.000000e+00> : vector<16x128xf32>
    %48 = tpu.matmul %44, %47, %cst_17 {dimension_numbers = #tpu.dot_dimension_numbers<[1], [0], [0], [1], [0, 0, 1, 1], [], []>} : vector<16x128xbf16>, vector<128x128xbf16>, vector<16x128xf32> -> vector<16x128xf32>
    %cst_18 = arith.constant dense<0.000000e+00> : vector<128xf32>
    %49 = vector.multi_reduction <add>, %48, %cst_18 [0] : vector<16x128xf32> to vector<128xf32>
    %50 = vector.shape_cast %49 : vector<128xf32> to vector<1x128xf32>
    %cst_19 = arith.constant 1.250000e-01 : f32
    %51 = vector.broadcast %cst_19 : f32 to vector<1x128xf32>
    %52 = arith.mulf %50, %51 : vector<1x128xf32>
    %53 = arith.mulf %48, %48 : vector<16x128xf32>
    %cst_20 = arith.constant dense<0.000000e+00> : vector<128xf32>
    %54 = vector.multi_reduction <add>, %53, %cst_20 [0] : vector<16x128xf32> to vector<128xf32>
    %55 = vector.shape_cast %54 : vector<128xf32> to vector<1x128xf32>
    %cst_21 = arith.constant 1.250000e-01 : f32
    %56 = vector.broadcast %cst_21 : f32 to vector<1x128xf32>
    %57 = arith.mulf %55, %56 : vector<1x128xf32>
    %58 = arith.mulf %52, %52 : vector<1x128xf32>
    %59 = arith.subf %57, %58 : vector<1x128xf32>
    %c0_22 = arith.constant 0 : index
    %c0_23 = arith.constant 0 : index
    %60 = vector.load %arg5[%c0_22, %c0_23] : memref<1x128xf32, #tpu.memory_space<vmem>>, vector<1x128xf32>
    %cst_24 = arith.constant 9.99999974E-6 : f32
    %61 = vector.broadcast %cst_24 : f32 to vector<1x128xf32>
    %62 = arith.addf %59, %61 : vector<1x128xf32>
    %63 = math.rsqrt %62 : vector<1x128xf32>
    %64 = arith.mulf %60, %63 : vector<1x128xf32>
    %c0_25 = arith.constant 0 : index
    %c0_26 = arith.constant 0 : index
    %65 = vector.load %arg6[%c0_25, %c0_26] : memref<1x128xf32, #tpu.memory_space<vmem>>, vector<1x128xf32>
    %66 = arith.mulf %52, %64 : vector<1x128xf32>
    %67 = arith.subf %65, %66 : vector<1x128xf32>
    %68 = vector.broadcast %64 : vector<1x128xf32> to vector<16x128xf32>
    %69 = arith.mulf %48, %68 : vector<16x128xf32>
    %70 = vector.broadcast %67 : vector<1x128xf32> to vector<16x128xf32>
    %71 = arith.addf %69, %70 : vector<16x128xf32>
    %cst_27 = arith.constant 0.000000e+00 : f32
    %72 = vector.broadcast %cst_27 : f32 to vector<16x128xf32>
    %73 = arith.maximumf %71, %72 : vector<16x128xf32>
    %74 = arith.truncf %73 : vector<16x128xf32> to vector<16x128xbf16>
    %cst_28 = arith.constant 0.000000e+00 : f32
    %75 = arith.truncf %cst_28 : f32 to bf16
    %76 = vector.shape_cast %10 : vector<16x1xi1> to vector<16x1xi1>
    %77 = vector.broadcast %76 : vector<16x1xi1> to vector<16x128xi1>
    %78 = vector.broadcast %75 : bf16 to vector<16x128xbf16>
    %79 = arith.select %77, %74, %78 : vector<16x128xi1>, vector<16x128xbf16>
    %c1_i32_29 = arith.constant 1 : i32
    %80 = tpu.memref_slice %arg20[%c1_i32_29] : memref<4x!tpu.dma_semaphore, #tpu.memory_space<semaphore_mem>> -> memref<1x!tpu.dma_semaphore, #tpu.memory_space<semaphore_mem>>
    %81 = tpu.memref_squeeze %80 : memref<1x!tpu.dma_semaphore, #tpu.memory_space<semaphore_mem>> -> memref<!tpu.dma_semaphore, #tpu.memory_space<semaphore_mem>>
    tpu.wait_dma2 semaphore(%81 : memref<!tpu.dma_semaphore, #tpu.memory_space<semaphore_mem>>) src(%arg7 : memref<128x128xbf16, #tpu.memory_space<any>>) dst(%arg17 : memref<128x128xbf16, #tpu.memory_space<vmem>>)
    %c0_30 = arith.constant 0 : index
    %c0_31 = arith.constant 0 : index
    %82 = vector.load %arg17[%c0_30, %c0_31] : memref<128x128xbf16, #tpu.memory_space<vmem>>, vector<128x128xbf16>
    %cst_32 = arith.constant dense<0.000000e+00> : vector<16x128xf32>
    %83 = tpu.matmul %79, %82, %cst_32 {dimension_numbers = #tpu.dot_dimension_numbers<[1], [0], [0], [1], [0, 0, 1, 1], [], []>} : vector<16x128xbf16>, vector<128x128xbf16>, vector<16x128xf32> -> vector<16x128xf32>
    %cst_33 = arith.constant dense<0.000000e+00> : vector<128xf32>
    %84 = vector.multi_reduction <add>, %83, %cst_33 [0] : vector<16x128xf32> to vector<128xf32>
    %85 = vector.shape_cast %84 : vector<128xf32> to vector<1x128xf32>
    %cst_34 = arith.constant 1.250000e-01 : f32
    %86 = vector.broadcast %cst_34 : f32 to vector<1x128xf32>
    %87 = arith.mulf %85, %86 : vector<1x128xf32>
    %88 = arith.mulf %83, %83 : vector<16x128xf32>
    %cst_35 = arith.constant dense<0.000000e+00> : vector<128xf32>
    %89 = vector.multi_reduction <add>, %88, %cst_35 [0] : vector<16x128xf32> to vector<128xf32>
    %90 = vector.shape_cast %89 : vector<128xf32> to vector<1x128xf32>
    %cst_36 = arith.constant 1.250000e-01 : f32
    %91 = vector.broadcast %cst_36 : f32 to vector<1x128xf32>
    %92 = arith.mulf %90, %91 : vector<1x128xf32>
    %93 = arith.mulf %87, %87 : vector<1x128xf32>
    %94 = arith.subf %92, %93 : vector<1x128xf32>
    %c0_37 = arith.constant 0 : index
    %c0_38 = arith.constant 0 : index
    %95 = vector.load %arg8[%c0_37, %c0_38] : memref<1x128xf32, #tpu.memory_space<vmem>>, vector<1x128xf32>
    %cst_39 = arith.constant 9.99999974E-6 : f32
    %96 = vector.broadcast %cst_39 : f32 to vector<1x128xf32>
    %97 = arith.addf %94, %96 : vector<1x128xf32>
    %98 = math.rsqrt %97 : vector<1x128xf32>
    %99 = arith.mulf %95, %98 : vector<1x128xf32>
    %c0_40 = arith.constant 0 : index
    %c0_41 = arith.constant 0 : index
    %100 = vector.load %arg9[%c0_40, %c0_41] : memref<1x128xf32, #tpu.memory_space<vmem>>, vector<1x128xf32>
    %101 = arith.mulf %87, %99 : vector<1x128xf32>
    %102 = arith.subf %100, %101 : vector<1x128xf32>
    %103 = vector.broadcast %99 : vector<1x128xf32> to vector<16x128xf32>
    %104 = arith.mulf %83, %103 : vector<16x128xf32>
    %105 = vector.broadcast %102 : vector<1x128xf32> to vector<16x128xf32>
    %106 = arith.addf %104, %105 : vector<16x128xf32>
    %cst_42 = arith.constant 0.000000e+00 : f32
    %107 = vector.broadcast %cst_42 : f32 to vector<16x128xf32>
    %108 = arith.maximumf %106, %107 : vector<16x128xf32>
    %109 = arith.truncf %108 : vector<16x128xf32> to vector<16x128xbf16>
    %cst_43 = arith.constant 0.000000e+00 : f32
    %110 = arith.truncf %cst_43 : f32 to bf16
    %111 = vector.shape_cast %10 : vector<16x1xi1> to vector<16x1xi1>
    %112 = vector.broadcast %111 : vector<16x1xi1> to vector<16x128xi1>
    %113 = vector.broadcast %110 : bf16 to vector<16x128xbf16>
    %114 = arith.select %112, %109, %113 : vector<16x128xi1>, vector<16x128xbf16>
    %c2_i32_44 = arith.constant 2 : i32
    %115 = tpu.memref_slice %arg20[%c2_i32_44] : memref<4x!tpu.dma_semaphore, #tpu.memory_space<semaphore_mem>> -> memref<1x!tpu.dma_semaphore, #tpu.memory_space<semaphore_mem>>
    %116 = tpu.memref_squeeze %115 : memref<1x!tpu.dma_semaphore, #tpu.memory_space<semaphore_mem>> -> memref<!tpu.dma_semaphore, #tpu.memory_space<semaphore_mem>>
    tpu.wait_dma2 semaphore(%116 : memref<!tpu.dma_semaphore, #tpu.memory_space<semaphore_mem>>) src(%arg10 : memref<128x256xbf16, #tpu.memory_space<any>>) dst(%arg18 : memref<128x256xbf16, #tpu.memory_space<vmem>>)
    %c0_45 = arith.constant 0 : index
    %c0_46 = arith.constant 0 : index
    %117 = vector.load %arg18[%c0_45, %c0_46] : memref<128x256xbf16, #tpu.memory_space<vmem>>, vector<128x256xbf16>
    %cst_47 = arith.constant dense<0.000000e+00> : vector<16x256xf32>
    %118 = tpu.matmul %114, %117, %cst_47 {dimension_numbers = #tpu.dot_dimension_numbers<[1], [0], [0], [1], [0, 0, 1, 1], [], []>} : vector<16x128xbf16>, vector<128x256xbf16>, vector<16x256xf32> -> vector<16x256xf32>
    %cst_48 = arith.constant dense<0.000000e+00> : vector<256xf32>
    %119 = vector.multi_reduction <add>, %118, %cst_48 [0] : vector<16x256xf32> to vector<256xf32>
    %120 = vector.shape_cast %119 : vector<256xf32> to vector<1x256xf32>
    %cst_49 = arith.constant 1.250000e-01 : f32
    %121 = vector.broadcast %cst_49 : f32 to vector<1x256xf32>
    %122 = arith.mulf %120, %121 : vector<1x256xf32>
    %123 = arith.mulf %118, %118 : vector<16x256xf32>
    %cst_50 = arith.constant dense<0.000000e+00> : vector<256xf32>
    %124 = vector.multi_reduction <add>, %123, %cst_50 [0] : vector<16x256xf32> to vector<256xf32>
    %125 = vector.shape_cast %124 : vector<256xf32> to vector<1x256xf32>
    %cst_51 = arith.constant 1.250000e-01 : f32
    %126 = vector.broadcast %cst_51 : f32 to vector<1x256xf32>
    %127 = arith.mulf %125, %126 : vector<1x256xf32>
    %128 = arith.mulf %122, %122 : vector<1x256xf32>
    %129 = arith.subf %127, %128 : vector<1x256xf32>
    %c0_52 = arith.constant 0 : index
    %c0_53 = arith.constant 0 : index
    %130 = vector.load %arg11[%c0_52, %c0_53] : memref<1x256xf32, #tpu.memory_space<vmem>>, vector<1x256xf32>
    %cst_54 = arith.constant 9.99999974E-6 : f32
    %131 = vector.broadcast %cst_54 : f32 to vector<1x256xf32>
    %132 = arith.addf %129, %131 : vector<1x256xf32>
    %133 = math.rsqrt %132 : vector<1x256xf32>
    %134 = arith.mulf %130, %133 : vector<1x256xf32>
    %c0_55 = arith.constant 0 : index
    %c0_56 = arith.constant 0 : index
    %135 = vector.load %arg12[%c0_55, %c0_56] : memref<1x256xf32, #tpu.memory_space<vmem>>, vector<1x256xf32>
    %136 = arith.mulf %122, %134 : vector<1x256xf32>
    %137 = arith.subf %135, %136 : vector<1x256xf32>
    %138 = vector.broadcast %134 : vector<1x256xf32> to vector<16x256xf32>
    %139 = arith.mulf %118, %138 : vector<16x256xf32>
    %140 = vector.broadcast %137 : vector<1x256xf32> to vector<16x256xf32>
    %141 = arith.addf %139, %140 : vector<16x256xf32>
    %cst_57 = arith.constant 0.000000e+00 : f32
    %142 = vector.broadcast %cst_57 : f32 to vector<16x256xf32>
    %143 = arith.maximumf %141, %142 : vector<16x256xf32>
    %144 = arith.truncf %143 : vector<16x256xf32> to vector<16x256xbf16>
    %cst_58 = arith.constant 0.000000e+00 : f32
    %145 = arith.truncf %cst_58 : f32 to bf16
    %146 = vector.shape_cast %10 : vector<16x1xi1> to vector<16x1xi1>
    %147 = vector.broadcast %146 : vector<16x1xi1> to vector<16x256xi1>
    %148 = vector.broadcast %145 : bf16 to vector<16x256xbf16>
    %149 = arith.select %147, %144, %148 : vector<16x256xi1>, vector<16x256xbf16>
    %c3_i32_59 = arith.constant 3 : i32
    %150 = tpu.memref_slice %arg20[%c3_i32_59] : memref<4x!tpu.dma_semaphore, #tpu.memory_space<semaphore_mem>> -> memref<1x!tpu.dma_semaphore, #tpu.memory_space<semaphore_mem>>
    %151 = tpu.memref_squeeze %150 : memref<1x!tpu.dma_semaphore, #tpu.memory_space<semaphore_mem>> -> memref<!tpu.dma_semaphore, #tpu.memory_space<semaphore_mem>>
    tpu.wait_dma2 semaphore(%151 : memref<!tpu.dma_semaphore, #tpu.memory_space<semaphore_mem>>) src(%arg13 : memref<256x128xbf16, #tpu.memory_space<any>>) dst(%arg19 : memref<256x128xbf16, #tpu.memory_space<vmem>>)
    %c0_60 = arith.constant 0 : index
    %c0_61 = arith.constant 0 : index
    %152 = vector.load %arg19[%c0_60, %c0_61] : memref<256x128xbf16, #tpu.memory_space<vmem>>, vector<256x128xbf16>
    %cst_62 = arith.constant dense<0.000000e+00> : vector<16x128xf32>
    %153 = tpu.matmul %149, %152, %cst_62 {dimension_numbers = #tpu.dot_dimension_numbers<[1], [0], [0], [1], [0, 0, 1, 1], [], []>} : vector<16x256xbf16>, vector<256x128xbf16>, vector<16x128xf32> -> vector<16x128xf32>
    %c0_63 = arith.constant 0 : index
    %c0_64 = arith.constant 0 : index
    %154 = vector.load %arg14[%c0_63, %c0_64] : memref<1x128xf32, #tpu.memory_space<vmem>>, vector<1x128xf32>
    %155 = vector.broadcast %154 : vector<1x128xf32> to vector<16x128xf32>
    %156 = arith.addf %153, %155 : vector<16x128xf32>
    %cst_65 = arith.constant 0.000000e+00 : f32
    %157 = vector.broadcast %cst_65 : f32 to vector<16x128xf32>
    %158 = arith.subf %157, %156 : vector<16x128xf32>
    %159 = math.exp %158 : vector<16x128xf32>
    %cst_66 = arith.constant 1.000000e+00 : f32
    %160 = vector.broadcast %cst_66 : f32 to vector<16x128xf32>
    %161 = arith.addf %160, %159 : vector<16x128xf32>
    %162 = tpu.reciprocal %161 {approx = true} : vector<16x128xf32> -> vector<16x128xf32>
    %163 = arith.truncf %162 : vector<16x128xf32> to vector<16x128xbf16>
    %c0_67 = arith.constant 0 : index
    %c0_68 = arith.constant 0 : index
    %164 = vector.load %arg15[%c0_67, %c0_68] : memref<16x128xbf16, #tpu.memory_space<vmem>>, vector<16x128xbf16>
    tpu.vector_store %arg15[%c0_67, %c0_68], %163 {strides = array<i32>} : memref<16x128xbf16, #tpu.memory_space<vmem>>, vector<16x128xbf16>,
    return
  }
}

</mosaic_0001>

<bundles_post_ra>
// kernel: generator_forward.1
= control target key start
LH: loop header
LB: loop body
LE: loop exit
PB: predicated region body
PF: predicated region fallthrough
CT: control target
= control target key end

     0   :  { %20 = vsyncpa [#allocation8], 0  ;;  %s1093_s18 = smov [#allocation7]   ;;  %s1365_s0 = inlined_call_operand.vmem [shape: bf16[16,128], index: 0, kind: input, shape index: {}]   ;;  %s1366_s1 = inlined_call_operand.hbm [shape: bf16[128,128], index: 1, kind: input, shape index: {}]   ;;  %s1367_s2 = inlined_call_operand.vmem [shape: f32[1,128], index: 2, kind: input, shape index: {}]   ;;  %s1368_s3 = inlined_call_operand.vmem [shape: f32[1,128], index: 3, kind: input, shape index: {}]   ;;  %s1369_s4 = inlined_call_operand.hbm [shape: bf16[128,128], index: 4, kind: input, shape index: {}]   ;;  %s1370_s5 = inlined_call_operand.vmem [shape: f32[1,128], index: 5, kind: input, shape index: {}]   ;;  %s1371_s6 = inlined_call_operand.vmem [shape: f32[1,128], index: 6, kind: input, shape index: {}]   ;;  %s1372_s7 = inlined_call_operand.hbm [shape: bf16[128,128], index: 7, kind: input, shape index: {}]   ;;  %s1373_s8 = inlined_call_operand.vmem [shape: f32[1,128], index: 8, kind: input, shape index: {}]   ;;  %s1374_s9 = inlined_call_operand.vmem [shape: f32[1,128], index: 9, kind: input, shape index: {}]   ;;  %s1375_s10 = inlined_call_operand.hbm [shape: bf16[128,256], index: 10, kind: input, shape index: {}]   ;;  %s1376_s11 = inlined_call_operand.vmem [shape: f32[1,256], index: 11, kind: input, shape index: {}]   ;;  %s1377_s12 = inlined_call_operand.vmem [shape: f32[1,256], index: 12, kind: input, shape index: {}]   ;;  %s1378_s13 = inlined_call_operand.hbm [shape: bf16[256,128], index: 13, kind: input, shape index: {}]   ;;  %s1379_s14 = inlined_call_operand.vmem [shape: f32[1,128], index: 14, kind: input, shape index: {}]   ;;  %s1380_s15 = inlined_call_operand.vmem [shape: bf16[16,128], index: 15, kind: output, shape index: {}]  }
   0x1   :  { %s28_s19 = sshll.u32 %s1093_s18, 4  ;;  %s995_s22 = scalar_lea.hbm %s1366_s1, 1024  ;;  %s29_s19 = int_to_ptr.vmem [resolvable:$true] %s28_s19 }
   0x2   :  { %p996_p0 = scmp.ne.s32.totalorder %s1366_s1, %s995_s22  ;;  %p999_p1 = scmp.lt.u32.totalorder %s995_s22, %s1366_s1 }
   0x4   :  { %p1001_p2 = pnand %p999_p1, %p996_p0 }
   0x6   :  { %1004 = shalt.err (!%p1001_p2)
}
   0x7   :  { %s1005_s27 = scalar_lea.vmem %s29_s19, 1024  ;;  %p1010_p4 = scmp.lt.s32.totalorder %s29_s19, %s29_s19 }
   0x8   :  { %p1006_p3 = scmp.ne.s32.totalorder %s29_s19, %s1005_s27  ;;  %p1011_p5 = scmp.lt.s32.totalorder %s1005_s27, %s1005_s27 }
   0xa   :  { %p1012_p6 = por %p1011_p5, %p1010_p4 }
   0xc   :  { %p1013_p7 = pnand %p1012_p6, %p1006_p3 }
   0xe   :  { %1016 = shalt.err (!%p1013_p7)
}
   0xf   :  { %s1094_s28 = smov 64   ;;  %s1095_s29 = smov 4  }
  0x10   :  { %34 = dma.hbm_to_vmem [thread:$0]  %s1366_s1, 1024, %s29_s19, [#allocation8], %s1094_s28, %s1094_s28, %s1095_s29  }
  0x11   :  { %1083 = dma.done.wait [#allocation8], 1024  }
  0x12   :  { %1084 = vsyncadd [#allocation8], 4294966272  ;;  %s87_s17 = sld [smem:[#allocation0]]   ;;  %s1096_s18 = smov 256   ;;  %v1097_v0 = vmov 0.0   ;;  %vm1098_vm0 = vmmov 0  }
  0x13   :  { %99 = sst [smem:[#allocation16]] %s1096_s18  ;;  %891 = vmatprep.subr.bf16.mxu0 %v1097_v0  ;;  %907 = vmatprep.mubr.msk.bf16.mxu0 %vm1098_vm0, %v1097_v0  ;;  %vm299_vm1 = vmpackc.low %vm1098_vm0, %vm1098_vm0  ;;  %vm1099_vm2 = vmmov 1   ;;  %v1100_v1 = vmov 0   ;;  %s1101_s1 = smov 2  }
  0x14   :  { %101 = sst [smem:[#allocation16 + $0x1]] %s1096_s18  ;;  %vm298_vm3 = vmpackc.low %vm1099_vm2, %vm1099_vm2  ;;  %v301_v2 = vsel %vm299_vm1, 65537, %v1100_v1  ;;  %s1102_s19 = smov [#allocation2]  }
  0x15   :  { %103 = sst [smem:[#allocation16 + $0x2]] %s1101_s1  ;;  %v300_v3 = vsel %vm298_vm3, 65537, %v1100_v1  ;;  %s66_s20 = sshll.u32 %s1102_s19, 4  ;;  %s67_s20 = int_to_ptr.vmem [resolvable:$true] %s66_s20 }
  0x16   :  { %105 = sst [smem:[#allocation16 + $0x3]] %s1094_s28  ;;  %v822_v4 = vcombine.low %v300_v3, %v301_v2  ;;  %s1103_s21 = smov 128  }
  0x17   :  { %107 = sst [smem:[#allocation16 + $0x4]] %s1103_s21  ;;  %s1104_s24 = smov [#allocation3]  }
  0x18   :  { %109 = sst [smem:[#allocation16 + $0x5]] %s1101_s1  ;;  %vm1213_vm4 = vcmp.ne.s16.totalorder %v822_v4, 0  ;;  %s811_s22 = sshll.u32 %s87_s17, 26 }
  0x19   :  { %111 = sst [smem:[#allocation16 + $0x6]] %s1103_s21  ;;  %s1217_s23 = sadd.s32 134217728, %s811_s22 }
  0x1a   :  { %113 = sst [smem:[#allocation16 + $0x7]] %s1094_s28  ;;  %s78_s25 = sshll.u32 %s1104_s24, 4  ;;  %s79_s25 = int_to_ptr.vmem [resolvable:$true] %s78_s25 }
  0x1b   :  { %115 = sst [smem:[#allocation16 + $0x8]] %s1095_s29  ;;  %s1017_s30 = scalar_lea.hbm %s1369_s4, 1024 }
  0x1c   :  { %p1018_p8 = scmp.ne.s32.totalorder %s1369_s4, %s1017_s30  ;;  %p1021_p9 = scmp.lt.u32.totalorder %s1017_s30, %s1369_s4 }
  0x1e   :  { %p1023_p10 = pnand %p1021_p9, %p1018_p8 }
  0x20   :  { %1026 = shalt.err (!%p1023_p10)  }
  0x21   :  { %s1027_s17 = scalar_lea.vmem %s67_s20, 1024  ;;  %p1032_p12 = scmp.lt.s32.totalorder %s67_s20, %s67_s20 }
  0x22   :  { %p1028_p11 = scmp.ne.s32.totalorder %s67_s20, %s1027_s17  ;;  %p1033_p13 = scmp.lt.s32.totalorder %s1027_s17, %s1027_s17 }
  0x24   :  { %p1034_p0 = por %p1033_p13, %p1032_p12 }
  0x26   :  { %p1035_p1 = pnand %p1034_p0, %p1028_p11 }
  0x28   :  { %1038 = shalt.err (!%p1035_p1)  }
  0x29   :  { %69 = dma.hbm_to_vmem [thread:$0]  %s1369_s4, 1024, %s67_s20, [#allocation6] }
  0x2a   :  { %s1039_s24 = scalar_lea.hbm %s1372_s7, 1024 }
  0x2b   :  { %p1040_p2 = scmp.ne.s32.totalorder %s1372_s7, %s1039_s24  ;;  %p1043_p3 = scmp.lt.u32.totalorder %s1039_s24, %s1372_s7 }
  0x2d   :  { %p1045_p4 = pnand %p1043_p3, %p1040_p2 }
  0x2f   :  { %1048 = shalt.err (!%p1045_p4)  }
  0x30   :  { %s1049_s18 = scalar_lea.vmem %s79_s25, 1024  ;;  %p1054_p6 = scmp.lt.s32.totalorder %s79_s25, %s79_s25 }
  0x31   :  { %p1050_p5 = scmp.ne.s32.totalorder %s79_s25, %s1049_s18  ;;  %p1055_p7 = scmp.lt.s32.totalorder %s1049_s18, %s1049_s18 }
  0x33   :  { %p1056_p8 = por %p1055_p7, %p1054_p6 }
  0x35   :  { %p1057_p9 = pnand %p1056_p8, %p1050_p5 }
  0x37   :  { %1060 = shalt.err (!%p1057_p9)  }
  0x38   :  { %81 = dma.hbm_to_vmem [thread:$0]  %s1372_s7, 1024, %s79_s25, [#allocation6 + $0x1] }
  0x39   :  { %s1105_s1 = smov [#allocation4]   ;;  %s1106_s17 = smov [#allocation6 + $0x2]  }
  0x3a   :  { %s95_s19 = sshll.u32 %s1105_s1, 4  ;;  %s1107_s28 = smov [#allocation15]   ;;  %s96_s19 = int_to_ptr.vmem [resolvable:$true] %s95_s19 }
  0x3b   :  { %117 = dma.general %s1375_s10, 2048, %s96_s19, %s1106_s17, %s1107_s28, [#allocation16], %s1217_s23, 0  }
  0x3c   :  { %v968_v6 = vld [vmem:[#allocation7] sm:$0xff]   ;;  %v969_v7 = vld [vmem:[#allocation7 + $0x8] sm:$0xff]   ;;  %v970_v8 = vld [vmem:[#allocation7 + $0x10] sm:$0xff]   ;;  %s1108_s23 = smov [#allocation5]   ;;  %s1061_s26 = scalar_lea.hbm %s1378_s13, 2048 }
  0x3d   :  { %892 = vmatpush3.bf16.msra.mxu0 %v968_v6  ;;  %v971_v9 = vld [vmem:[#allocation7 + $0x18] sm:$0xff]   ;;  %v972_v10 = vld [vmem:[#allocation7 + $0x20] sm:$0xff]   ;;  %v973_v11 = vld [vmem:[#allocation7 + $0x28] sm:$0xff]   ;;  %s126_s25 = sshll.u32 %s1108_s23, 4  ;;  %p1062_p10 = scmp.ne.s32.totalorder %s1378_s13, %s1061_s26  ;;  %s127_s25 = int_to_ptr.vmem [resolvable:$true] %s126_s25 }
  0x3e   :  { %893 = vmatprep.subr.bf16.mxu0 %v1097_v0  ;;  %v974_v12 = vld [vmem:[#allocation7 + $0x30] sm:$0xff]   ;;  %v975_v13 = vld [vmem:[#allocation7 + $0x38] sm:$0xff]   ;;  %v976_v14 = vld [vmem:[%s1365_s0] sm:$0xff]   ;;  %p1065_p11 = scmp.lt.u32.totalorder %s1061_s26, %s1378_s13 }
  0x40   :  { %p1067_p12 = pnand %p1065_p11, %p1062_p10 }
  0x41   :  { %894 = vmatpush3.bf16.msra.mxu0 %v969_v7 }
  0x42   :  { %895 = vmatprep.subr.bf16.mxu0 %v1097_v0 }
  0x45   :  { %896 = vmatpush3.bf16.msra.mxu0 %v970_v8 }
  0x46   :  { %897 = vmatprep.subr.bf16.mxu0 %v1097_v0 }
  0x49   :  { %898 = vmatpush3.bf16.msra.mxu0 %v971_v9 }
  0x4a   :  { %899 = vmatprep.subr.bf16.mxu0 %v1097_v0 }
  0x4d   :  { %900 = vmatpush3.bf16.msra.mxu0 %v972_v10 }
  0x4e   :  { %901 = vmatprep.subr.bf16.mxu0 %v1097_v0 }
  0x51   :  { %902 = vmatpush3.bf16.msra.mxu0 %v973_v11 }
  0x52   :  { %903 = vmatprep.subr.bf16.mxu0 %v1097_v0 }
  0x55   :  { %904 = vmatpush3.bf16.msra.mxu0 %v974_v12 }
  0x56   :  { %905 = vmatprep.subr.bf16.mxu0 %v1097_v0 }
  0x59   :  { %906 = vmatpush3.bf16.msra.mxu0 %v975_v13 }
  0x5c   :  { %908 = vmatmul.mubr.bf16.vlgmr.msra.gmra.mrb[0].mxu0 %v976_v14 }
  0x5d   :  { %1070 = shalt.err (!%p1067_p12)  }
  0x5e   :  { %s1071_s0 = scalar_lea.vmem %s127_s25, 2048  ;;  %p1076_p0 = scmp.lt.s32.totalorder %s127_s25, %s127_s25 }
  0x5f   :  { %p1072_p13 = scmp.ne.s32.totalorder %s127_s25, %s1071_s0  ;;  %p1077_p1 = scmp.lt.s32.totalorder %s1071_s0, %s1071_s0 }
  0x61   :  { %p1078_p2 = por %p1077_p1, %p1076_p0 }
  0x63   :  { %p1079_p3 = pnand %p1078_p2, %p1072_p13 }
  0x65   :  { %1082 = shalt.err (!%p1079_p3)  }
  0x66   :  { %129 = dma.hbm_to_vmem [thread:$0]  %s1378_s13, 2048, %s127_s25, [#allocation6 + $0x3]  ;;  %v276_v40 = vlaneseq  ;;  %v268_v42 = vld [vmem:[%s1367_s2] sm:$0x1] }
  0x67   :  { %v272_v46 = vld [vmem:[%s1368_s3] sm:$0x1] }
  0x68   :  { %v1271_v41 = vshrl.u32 %v276_v40, 7 }
  0x6a   :  { %v1277_v43 = vsub.s32 0, %v1271_v41 }
 0x12f   :  { %v241_v15 = vpop.f32.mrb[0].mxu0 }
 0x130   :  { %v909_v16 = vpop.f32.mrb[1].mxu0  ;;  %v256_v18 = vmul.f32 %v241_v15, %v241_v15 }
 0x131   :  { %v244_v17 = vpop.f32.mrb[2].mxu0 }
 0x132   :  { %v248_v19 = vadd.f32 %v244_v17, %v241_v15  ;;  %v257_v20 = vmul.f32 %v244_v17, %v244_v17  ;;  %v910_v21 = vpop.f32.mrb[3].mxu0 }
 0x134   :  { %v249_v22 = vrot.slane %v248_v19, 4  ;;  %v258_v23 = vadd.f32 %v257_v20, %v256_v18 }
 0x136   :  { %v250_v24 = vadd.f32 %v249_v22, %v248_v19  ;;  %v259_v25 = vrot.slane %v258_v23, 4 }
 0x138   :  { %v251_v26 = vrot.slane %v250_v24, 2  ;;  %v260_v27 = vadd.f32 %v259_v25, %v258_v23 }
 0x13a   :  { %v252_v28 = vadd.f32 %v251_v26, %v250_v24  ;;  %v261_v29 = vrot.slane %v260_v27, 2 }
 0x13c   :  { %v253_v30 = vrot.slane %v252_v28, 1  ;;  %v262_v31 = vadd.f32 %v261_v29, %v260_v27 }
 0x13e   :  { %v254_v32 = vadd.f32 %v253_v30, %v252_v28  ;;  %v263_v33 = vrot.slane %v262_v31, 1 }
 0x140   :  { %v255_v34 = vmul.f32 0.125, %v254_v32  ;;  %v264_v35 = vadd.f32 %v263_v33, %v262_v31 }
 0x142   :  { %v265_v36 = vmul.f32 0.125, %v264_v35  ;;  %v266_v37 = vmul.f32 %v255_v34, %v255_v34 }
 0x144   :  { %v267_v38 = vsub.f32 %v265_v36, %v266_v37 }
 0x146   :  { %v269_v39 = vadd.f32 1e-05, %v267_v38 }
 0x148   :  { %977 = vrsqrt.f32 %v269_v39 }
 0x152   :  { %v978_v44 = vpop.eup %977 }
 0x153   :  { %v271_v45 = vmul.f32 %v978_v44, %v268_v42 }
 0x155   :  { %v273_v47 = vmul.f32 %v271_v45, %v255_v34  ;;  %v279_v48 = vrot.slane %v271_v45, %v1277_v43 }
 0x157   :  { %v274_v49 = vsub.f32 %v272_v46, %v273_v47  ;;  %v281_v50 = vmul.f32 %v279_v48, %v241_v15  ;;  %v282_v51 = vmul.f32 %v279_v48, %v244_v17 }
 0x159   :  { %v287_v52 = vrot.slane %v274_v49, %v1277_v43 }
 0x15b   :  { %v289_v53 = vadd.f32 %v287_v52, %v281_v50  ;;  %v290_v54 = vadd.f32 %v287_v52, %v282_v51 }
 0x15d   :  { %v291_v55 = vmax.f32 %v289_v53, 0.0  ;;  %v292_v56 = vmax.f32 %v290_v54, 0.0 }
 0x15f   :  { %v293_v57 = vpack.c.bf16 %v292_v56, %v291_v55 }
 0x160   :  { %1085 = dma.done.wait [#allocation6], 1024 }
 0x161   :  { %1086 = vsyncadd [#allocation6], 4294966272  ;;  %911 = vmatprep.subr.bf16.mxu1 %v1097_v0  ;;  %927 = vmatprep.mubr.msk.bf16.mxu1 %vm1098_vm0, %v1097_v0  ;;  %v311_v58 = vld [vmem:[#allocation2] sm:$0xff]  ;;  %v312_v59 = vld [vmem:[#allocation2 + $0x8] sm:$0xff] }
 0x162   :  { %912 = vmatpush3.bf16.msra.mxu1 %v311_v58  ;;  %v313_v60 = vld [vmem:[#allocation2 + $0x10] sm:$0xff]  ;;  %v314_v61 = vld [vmem:[#allocation2 + $0x18] sm:$0xff]  ;;  %v315_v62 = vld [vmem:[#allocation2 + $0x20] sm:$0xff] }
 0x163   :  { %913 = vmatprep.subr.bf16.mxu1 %v1097_v0  ;;  %v316_v63 = vld [vmem:[#allocation2 + $0x28] sm:$0xff]  ;;  %v317_v2 = vld [vmem:[#allocation2 + $0x30] sm:$0xff]  ;;  %v318_v3 = vld [vmem:[#allocation2 + $0x38] sm:$0xff] }
 0x164   :  { %v380_v30 = vld [vmem:[%s1370_s5] sm:$0x1] }
 0x165   :  { %v384_v33 = vld [vmem:[%s1371_s6] sm:$0x1] }
 0x166   :  { %914 = vmatpush3.bf16.msra.mxu1 %v312_v59 }
 0x167   :  { %915 = vmatprep.subr.bf16.mxu1 %v1097_v0 }
 0x16a   :  { %916 = vmatpush3.bf16.msra.mxu1 %v313_v60 }
 0x16b   :  { %917 = vmatprep.subr.bf16.mxu1 %v1097_v0 }
 0x16e   :  { %918 = vmatpush3.bf16.msra.mxu1 %v314_v61 }
 0x16f   :  { %919 = vmatprep.subr.bf16.mxu1 %v1097_v0 }
 0x172   :  { %920 = vmatpush3.bf16.msra.mxu1 %v315_v62 }
 0x173   :  { %921 = vmatprep.subr.bf16.mxu1 %v1097_v0 }
 0x176   :  { %922 = vmatpush3.bf16.msra.mxu1 %v316_v63 }
 0x177   :  { %923 = vmatprep.subr.bf16.mxu1 %v1097_v0 }
 0x17a   :  { %924 = vmatpush3.bf16.msra.mxu1 %v317_v2 }
 0x17b   :  { %925 = vmatprep.subr.bf16.mxu1 %v1097_v0 }
 0x17e   :  { %926 = vmatpush3.bf16.msra.mxu1 %v318_v3 }
 0x181   :  { %928 = vmatmul.mubr.msk.bf16.vlgmr.msra.gmra.mrb[0].mxu1 %vm1213_vm4, %v293_v57 }
 0x254   :  { %v353_v4 = vpop.f32.mrb[0].mxu1 }
 0x255   :  { %v929_v6 = vpop.f32.mrb[1].mxu1  ;;  %v368_v8 = vmul.f32 %v353_v4, %v353_v4 }
 0x256   :  { %v356_v7 = vpop.f32.mrb[2].mxu1 }
 0x257   :  { %v360_v9 = vadd.f32 %v356_v7, %v353_v4  ;;  %v369_v10 = vmul.f32 %v356_v7, %v356_v7  ;;  %v930_v11 = vpop.f32.mrb[3].mxu1 }
 0x259   :  { %v361_v12 = vrot.slane %v360_v9, 4  ;;  %v370_v13 = vadd.f32 %v369_v10, %v368_v8 }
 0x25b   :  { %v362_v14 = vadd.f32 %v361_v12, %v360_v9  ;;  %v371_v15 = vrot.slane %v370_v13, 4 }
 0x25d   :  { %v363_v16 = vrot.slane %v362_v14, 2  ;;  %v372_v17 = vadd.f32 %v371_v15, %v370_v13 }
 0x25f   :  { %v364_v18 = vadd.f32 %v363_v16, %v362_v14  ;;  %v373_v19 = vrot.slane %v372_v17, 2 }
 0x261   :  { %v365_v20 = vrot.slane %v364_v18, 1  ;;  %v374_v21 = vadd.f32 %v373_v19, %v372_v17 }
 0x263   :  { %v366_v22 = vadd.f32 %v365_v20, %v364_v18  ;;  %v375_v23 = vrot.slane %v374_v21, 1 }
 0x265   :  { %v367_v24 = vmul.f32 0.125, %v366_v22  ;;  %v376_v25 = vadd.f32 %v375_v23, %v374_v21 }
 0x267   :  { %v377_v26 = vmul.f32 0.125, %v376_v25  ;;  %v378_v27 = vmul.f32 %v367_v24, %v367_v24 }
 0x269   :  { %v379_v28 = vsub.f32 %v377_v26, %v378_v27 }
 0x26b   :  { %v381_v29 = vadd.f32 1e-05, %v379_v28 }
 0x26d   :  { %979 = vrsqrt.f32 %v381_v29 }
 0x277   :  { %v980_v31 = vpop.eup %979 }
 0x278   :  { %v383_v32 = vmul.f32 %v980_v31, %v380_v30 }
 0x27a   :  { %v385_v34 = vmul.f32 %v383_v32, %v367_v24  ;;  %v391_v35 = vrot.slane %v383_v32, %v1277_v43 }
 0x27c   :  { %v386_v36 = vsub.f32 %v384_v33, %v385_v34  ;;  %v393_v37 = vmul.f32 %v391_v35, %v353_v4  ;;  %v394_v38 = vmul.f32 %v391_v35, %v356_v7 }
 0x27e   :  { %v399_v39 = vrot.slane %v386_v36, %v1277_v43 }
 0x280   :  { %v401_v40 = vadd.f32 %v399_v39, %v393_v37  ;;  %v402_v42 = vadd.f32 %v399_v39, %v394_v38 }
 0x282   :  { %v403_v44 = vmax.f32 %v401_v40, 0.0  ;;  %v404_v45 = vmax.f32 %v402_v42, 0.0 }
 0x284   :  { %v405_v46 = vpack.c.bf16 %v404_v45, %v403_v44 }
 0x285   :  { %1087 = dma.done.wait [#allocation6 + $0x1], 1024 }
 0x286   :  { %1088 = vsyncadd [#allocation6 + $0x1], 4294966272  ;;  %931 = vmatprep.subr.bf16.mxu0 %v1097_v0  ;;  %947 = vmatprep.mubr.msk.bf16.mxu0 %vm1098_vm0, %v1097_v0  ;;  %v409_v47 = vld [vmem:[#allocation3] sm:$0xff]  ;;  %v410_v48 = vld [vmem:[#allocation3 + $0x8] sm:$0xff] }
 0x287   :  { %932 = vmatpush3.bf16.msra.mxu0 %v409_v47  ;;  %v411_v49 = vld [vmem:[#allocation3 + $0x10] sm:$0xff]  ;;  %v412_v50 = vld [vmem:[#allocation3 + $0x18] sm:$0xff]  ;;  %v413_v51 = vld [vmem:[#allocation3 + $0x20] sm:$0xff] }
 0x288   :  { %933 = vmatprep.subr.bf16.mxu0 %v1097_v0  ;;  %v414_v52 = vld [vmem:[#allocation3 + $0x28] sm:$0xff]  ;;  %v415_v53 = vld [vmem:[#allocation3 + $0x30] sm:$0xff]  ;;  %v416_v54 = vld [vmem:[#allocation3 + $0x38] sm:$0xff] }
 0x289   :  { %v478_v18 = vld [vmem:[%s1373_s8] sm:$0x1] }
 0x28a   :  { %v482_v21 = vld [vmem:[%s1374_s9] sm:$0x1] }
 0x28b   :  { %934 = vmatpush3.bf16.msra.mxu0 %v410_v48 }
 0x28c   :  { %935 = vmatprep.subr.bf16.mxu0 %v1097_v0 }
 0x28f   :  { %936 = vmatpush3.bf16.msra.mxu0 %v411_v49 }
 0x290   :  { %937 = vmatprep.subr.bf16.mxu0 %v1097_v0 }
 0x293   :  { %938 = vmatpush3.bf16.msra.mxu0 %v412_v50 }
 0x294   :  { %939 = vmatprep.subr.bf16.mxu0 %v1097_v0 }
 0x297   :  { %940 = vmatpush3.bf16.msra.mxu0 %v413_v51 }
 0x298   :  { %941 = vmatprep.subr.bf16.mxu0 %v1097_v0 }
 0x29b   :  { %942 = vmatpush3.bf16.msra.mxu0 %v414_v52 }
 0x29c   :  { %943 = vmatprep.subr.bf16.mxu0 %v1097_v0 }
 0x29f   :  { %944 = vmatpush3.bf16.msra.mxu0 %v415_v53 }
 0x2a0   :  { %945 = vmatprep.subr.bf16.mxu0 %v1097_v0 }
 0x2a3   :  { %946 = vmatpush3.bf16.msra.mxu0 %v416_v54 }
 0x2a6   :  { %948 = vmatmul.mubr.msk.bf16.vlgmr.msra.gmra.mrb[4].mxu0 %vm1213_vm4, %v405_v46 }
 0x379   :  { %v451_v55 = vpop.f32.mrb[4].mxu0 }
 0x37a   :  { %v949_v56 = vpop.f32.mrb[5].mxu0  ;;  %v466_v58 = vmul.f32 %v451_v55, %v451_v55 }
 0x37b   :  { %v454_v57 = vpop.f32.mrb[6].mxu0 }
 0x37c   :  { %v458_v59 = vadd.f32 %v454_v57, %v451_v55  ;;  %v467_v60 = vmul.f32 %v454_v57, %v454_v57  ;;  %v950_v61 = vpop.f32.mrb[7].mxu0 }
 0x37e   :  { %v459_v62 = vrot.slane %v458_v59, 4  ;;  %v468_v63 = vadd.f32 %v467_v60, %v466_v58 }
 0x380   :  { %v460_v2 = vadd.f32 %v459_v62, %v458_v59  ;;  %v469_v3 = vrot.slane %v468_v63, 4 }
 0x382   :  { %v461_v4 = vrot.slane %v460_v2, 2  ;;  %v470_v6 = vadd.f32 %v469_v3, %v468_v63 }
 0x384   :  { %v462_v7 = vadd.f32 %v461_v4, %v460_v2  ;;  %v471_v0 = vrot.slane %v470_v6, 2 }
 0x386   :  { %v463_v8 = vrot.slane %v462_v7, 1  ;;  %v472_v9 = vadd.f32 %v471_v0, %v470_v6 }
 0x388   :  { %v464_v10 = vadd.f32 %v463_v8, %v462_v7  ;;  %v473_v11 = vrot.slane %v472_v9, 1 }
 0x38a   :  { %v465_v12 = vmul.f32 0.125, %v464_v10  ;;  %v474_v13 = vadd.f32 %v473_v11, %v472_v9 }
 0x38c   :  { %v475_v14 = vmul.f32 0.125, %v474_v13  ;;  %v476_v15 = vmul.f32 %v465_v12, %v465_v12 }
 0x38e   :  { %v477_v16 = vsub.f32 %v475_v14, %v476_v15 }
 0x390   :  { %v479_v17 = vadd.f32 1e-05, %v477_v16 }
 0x392   :  { %981 = vrsqrt.f32 %v479_v17 }
 0x39c   :  { %v982_v19 = vpop.eup %981 }
 0x39d   :  { %v481_v20 = vmul.f32 %v982_v19, %v478_v18 }
 0x39f   :  { %v483_v22 = vmul.f32 %v481_v20, %v465_v12  ;;  %v489_v23 = vrot.slane %v481_v20, %v1277_v43 }
 0x3a1   :  { %v484_v24 = vsub.f32 %v482_v21, %v483_v22  ;;  %v491_v25 = vmul.f32 %v489_v23, %v451_v55  ;;  %v492_v26 = vmul.f32 %v489_v23, %v454_v57 }
 0x3a3   :  { %v497_v27 = vrot.slane %v484_v24, %v1277_v43 }
 0x3a5   :  { %v499_v28 = vadd.f32 %v497_v27, %v491_v25  ;;  %v500_v29 = vadd.f32 %v497_v27, %v492_v26 }
 0x3a7   :  { %v501_v30 = vmax.f32 %v499_v28, 0.0  ;;  %v502_v31 = vmax.f32 %v500_v29, 0.0 }
 0x3a9   :  { %v503_v32 = vpack.c.bf16 %v502_v31, %v501_v30 }
 0x3aa   :  { %1089 = dma.done.wait [#allocation6 + $0x2], 2048 }
 0x3ab   :  { %1090 = vsyncadd [#allocation6 + $0x2], 4294965248  ;;  %556 = vmatprep.mubr.bf16.mxu1 %v1100_v1  ;;  %v509_v33 = vld [vmem:[#allocation4 + $0x8] sm:$0xff]  ;;  %v508_v34 = vld [vmem:[#allocation4] sm:$0xff] }
 0x3ac   :  { %v511_v35 = vld [vmem:[#allocation4 + $0x18] sm:$0xff]  ;;  %524 = vmatprep.subr.bf16.mxu1 %v509_v33  ;;  %v510_v36 = vld [vmem:[#allocation4 + $0x10] sm:$0xff]  ;;  %v513_v37 = vld [vmem:[#allocation4 + $0x28] sm:$0xff] }
 0x3ad   :  { %525 = vmatpush1.bf16.msra.mxu1 %v508_v34  ;;  %v512_v38 = vld [vmem:[#allocation4 + $0x20] sm:$0xff]  ;;  %v515_v39 = vld [vmem:[#allocation4 + $0x38] sm:$0xff]  ;;  %v514_v40 = vld [vmem:[#allocation4 + $0x30] sm:$0xff]  ;;  %v1109_v34 = vmov 1966171168  }
 0x3ae   :  { %526 = vmatprep.subr.bf16.mxu1 %v511_v35  ;;  %v517_v42 = vld [vmem:[#allocation4 + $0x48] sm:$0xff]  ;;  %v516_v44 = vld [vmem:[#allocation4 + $0x40] sm:$0xff]  ;;  %v519_v1 = vld [vmem:[#allocation4 + $0x58] sm:$0xff]  ;;  %v616_v35 = vunpack.c.l.s4 %v1109_v34 }
 0x3af   :  { %v518_v45 = vld [vmem:[#allocation4 + $0x50] sm:$0xff]  ;;  %v521_v46 = vld [vmem:[#allocation4 + $0x68] sm:$0xff]  ;;  %v520_v47 = vld [vmem:[#allocation4 + $0x60] sm:$0xff] }
 0x3b0   :  { %v523_v48 = vld [vmem:[#allocation4 + $0x78] sm:$0xff]  ;;  %v522_v49 = vld [vmem:[#allocation4 + $0x70] sm:$0xff] }
 0x3b1   :  { %527 = vmatpush1.bf16.msra.mxu1 %v510_v36  ;;  %v617_v36 = vunpack.c.0.s8 %v616_v35 }
 0x3b2   :  { %528 = vmatprep.subr.bf16.mxu1 %v513_v37 }
 0x3b5   :  { %529 = vmatpush1.bf16.msra.mxu1 %v512_v38  ;;  %v620_v38 = vsub.s32 %v617_v36, %v1271_v41 }
 0x3b6   :  { %530 = vmatprep.subr.bf16.mxu1 %v515_v39 }
 0x3b9   :  { %531 = vmatpush1.bf16.msra.mxu1 %v514_v40 }
 0x3ba   :  { %532 = vmatprep.subr.bf16.mxu1 %v517_v42 }
 0x3bd   :  { %533 = vmatpush1.bf16.msra.mxu1 %v516_v44  ;;  %v607_v44 = vld [vmem:[%s1376_s11] sm:$0x3] }
 0x3be   :  { %534 = vmatprep.subr.bf16.mxu1 %v519_v1 }
 0x3c1   :  { %535 = vmatpush1.bf16.msra.mxu1 %v518_v45  ;;  %v639_v45 = vsub.s32 1, %v1271_v41 }
 0x3c2   :  { %536 = vmatprep.subr.bf16.mxu1 %v521_v46 }
 0x3c5   :  { %537 = vmatpush1.bf16.msra.mxu1 %v520_v47 }
 0x3c6   :  { %538 = vmatprep.subr.bf16.mxu1 %v523_v48 }
 0x3c9   :  { %539 = vmatpush1.bf16.msra.mxu1 %v522_v49 }
 0x3cc   :  { %825 = vmatmul.mubr.msk.bf16.vlgmr.msra.gmra.mrb[4].mxu1 %vm1213_vm4, %v503_v32 }
 0x49f   :  { %v1327_v50 = vpop.f32.mrb[4].mxu1 }
 0x4a0   :  { %v1329_v51 = vpop.f32.mrb[5].mxu1  ;;  %v583_v53 = vmul.f32 %v1327_v50, %v1327_v50 }
 0x4a1   :  { %v1331_v52 = vpop.f32.mrb[6].mxu1  ;;  %v584_v57 = vmul.f32 %v1329_v51, %v1329_v51 }
 0x4a2   :  { %v567_v54 = vadd.f32 %v1331_v52, %v1327_v50  ;;  %v585_v55 = vmul.f32 %v1331_v52, %v1331_v52  ;;  %v564_v56 = vpop.f32.mrb[7].mxu1 }
 0x4a3   :  { %v574_v58 = vadd.f32 %v564_v56, %v1329_v51  ;;  %v586_v59 = vmul.f32 %v564_v56, %v564_v56 }
 0x4a4   :  { %v568_v60 = vrot.slane %v567_v54, 4  ;;  %v587_v61 = vadd.f32 %v585_v55, %v583_v53 }
 0x4a5   :  { %v575_v62 = vrot.slane %v574_v58, 4  ;;  %v594_v63 = vadd.f32 %v586_v59, %v584_v57 }
 0x4a6   :  { %v569_v2 = vadd.f32 %v568_v60, %v567_v54  ;;  %v588_v3 = vrot.slane %v587_v61, 4 }
 0x4a7   :  { %v576_v4 = vadd.f32 %v575_v62, %v574_v58  ;;  %v595_v6 = vrot.slane %v594_v63, 4 }
 0x4a8   :  { %v570_v7 = vrot.slane %v569_v2, 2  ;;  %v589_v0 = vadd.f32 %v588_v3, %v587_v61  ;;  %v631_v61 = vld [vmem:[%s1377_s12] sm:$0x3] }
 0x4a9   :  { %v577_v8 = vrot.slane %v576_v4, 2  ;;  %v596_v9 = vadd.f32 %v595_v6, %v594_v63 }
 0x4aa   :  { %v571_v10 = vadd.f32 %v570_v7, %v569_v2  ;;  %v590_v11 = vrot.slane %v589_v0, 2 }
 0x4ab   :  { %v578_v12 = vadd.f32 %v577_v8, %v576_v4  ;;  %v597_v13 = vrot.slane %v596_v9, 2 }
 0x4ac   :  { %v572_v14 = vrot.slane %v571_v10, 1  ;;  %v591_v15 = vadd.f32 %v590_v11, %v589_v0 }
 0x4ad   :  { %v579_v16 = vrot.slane %v578_v12, 1  ;;  %v598_v17 = vadd.f32 %v597_v13, %v596_v9 }
 0x4ae   :  { %v573_v18 = vadd.f32 %v572_v14, %v571_v10  ;;  %v592_v19 = vrot.slane %v591_v15, 1 }
 0x4af   :  { %v580_v20 = vadd.f32 %v579_v16, %v578_v12  ;;  %v599_v21 = vrot.slane %v598_v17, 1 }
 0x4b0   :  { %v581_v22 = vmul.f32 0.125, %v573_v18  ;;  %v593_v23 = vadd.f32 %v592_v19, %v591_v15 }
 0x4b1   :  { %v582_v24 = vmul.f32 0.125, %v580_v20  ;;  %v600_v25 = vadd.f32 %v599_v21, %v598_v17 }
 0x4b2   :  { %v601_v26 = vmul.f32 0.125, %v593_v23  ;;  %v603_v27 = vmul.f32 %v581_v22, %v581_v22 }
 0x4b3   :  { %v602_v28 = vmul.f32 0.125, %v600_v25  ;;  %v604_v29 = vmul.f32 %v582_v24, %v582_v24 }
 0x4b4   :  { %v605_v30 = vsub.f32 %v601_v26, %v603_v27 }
 0x4b5   :  { %v606_v31 = vsub.f32 %v602_v28, %v604_v29 }
 0x4b6   :  { %v608_v32 = vadd.f32 1e-05, %v605_v30 }
 0x4b7   :  { %v609_v33 = vadd.f32 1e-05, %v606_v31 }
 0x4b8   :  { %983 = vrsqrt.f32 %v608_v32 }
 0x4b9   :  { %985 = vrsqrt.f32 %v609_v33 }
 0x4c2   :  { %v984_v37 = vpop.eup %983 }
 0x4c3   :  { %v986_v39 = vpop.eup %985 }
 0x4c4   :  { %v614_v40 = vcombine.low %v984_v37, %v986_v39 }
 0x4c6   :  { %v621_v42 = vrot.slane %v614_v40, %v620_v38 }
 0x4c8   :  { %v628_v1 = vrot.slane %v621_v42, %v620_v38 }
 0x4ca   :  { %v630_v46 = vmul.f32 %v628_v1, %v607_v44 }
 0x4cc   :  { %v636_v47 = vrot.slane %v630_v46, %v1277_v43  ;;  %v640_v48 = vrot.slane %v630_v46, %v639_v45 }
 0x4ce   :  { %v643_v49 = vmul.f32 %v636_v47, %v581_v22  ;;  %v644_v53 = vmul.f32 %v640_v48, %v582_v24  ;;  %v664_v54 = vmul.f32 %v636_v47, %v1327_v50  ;;  %v665_v55 = vmul.f32 %v640_v48, %v1329_v51 }
 0x4cf   :  { %v666_v57 = vmul.f32 %v636_v47, %v1331_v52  ;;  %v667_v58 = vmul.f32 %v640_v48, %v564_v56 }
 0x4d0   :  { %v647_v59 = vcombine.low %v643_v49, %v644_v53 }
 0x4d2   :  { %v654_v60 = vrot.slane %v647_v59, %v620_v38 }
 0x4d4   :  { %v661_v41 = vrot.slane %v654_v60, %v620_v38 }
 0x4d6   :  { %v663_v62 = vsub.f32 %v631_v61, %v661_v41 }
 0x4d8   :  { %v672_v63 = vrot.slane %v663_v62, %v1277_v43  ;;  %v676_v2 = vrot.slane %v663_v62, %v639_v45 }
 0x4da   :  { %v679_v3 = vadd.f32 %v672_v63, %v664_v54  ;;  %v680_v4 = vadd.f32 %v676_v2, %v665_v55  ;;  %v681_v6 = vadd.f32 %v672_v63, %v666_v57  ;;  %v682_v50 = vadd.f32 %v676_v2, %v667_v58 }
 0x4dc   :  { %v683_v7 = vmax.f32 %v679_v3, 0.0  ;;  %v684_v51 = vmax.f32 %v680_v4, 0.0  ;;  %v685_v0 = vmax.f32 %v681_v6, 0.0  ;;  %v686_v52 = vmax.f32 %v682_v50, 0.0 }
 0x4de   :  { %v687_v56 = vpack.c.bf16 %v685_v0, %v683_v7  ;;  %v688_v8 = vpack.c.bf16 %v686_v52, %v684_v51 }
 0x4df   :  { %1091 = dma.done.wait [#allocation6 + $0x3], 2048 }
 0x4e0   :  { %1092 = vsyncadd [#allocation6 + $0x3], 4294965248  ;;  %827 = vmatprep.mubr.msk.bf16.mxu0 %vm1213_vm4, %v688_v8  ;;  %v703_v9 = vld [vmem:[#allocation5 + $0x40] sm:$0xff]  ;;  %v704_v11 = vld [vmem:[#allocation5 + $0x48] sm:$0xff] }
 0x4e1   :  { %v695_v10 = vld [vmem:[#allocation5] sm:$0xff]  ;;  %869 = vmatprep.subr.bf16.mxu0 %v703_v9  ;;  %v696_v43 = vld [vmem:[#allocation5 + $0x8] sm:$0xff]  ;;  %v705_v12 = vld [vmem:[#allocation5 + $0x50] sm:$0xff] }
 0x4e2   :  { %870 = vmatpush3.bf16.msra.mxu0 %v695_v10  ;;  %v697_v13 = vld [vmem:[#allocation5 + $0x10] sm:$0xff]  ;;  %v706_v14 = vld [vmem:[#allocation5 + $0x58] sm:$0xff]  ;;  %v707_v16 = vld [vmem:[#allocation5 + $0x60] sm:$0xff] }
 0x4e3   :  { %871 = vmatprep.subr.bf16.mxu0 %v704_v11  ;;  %v698_v15 = vld [vmem:[#allocation5 + $0x18] sm:$0xff]  ;;  %v699_v17 = vld [vmem:[#allocation5 + $0x20] sm:$0xff]  ;;  %v708_v18 = vld [vmem:[#allocation5 + $0x68] sm:$0xff] }
 0x4e4   :  { %v700_v19 = vld [vmem:[#allocation5 + $0x28] sm:$0xff]  ;;  %v709_v20 = vld [vmem:[#allocation5 + $0x70] sm:$0xff]  ;;  %v710_v22 = vld [vmem:[#allocation5 + $0x78] sm:$0xff] }
 0x4e5   :  { %v701_v21 = vld [vmem:[#allocation5 + $0x30] sm:$0xff]  ;;  %v702_v23 = vld [vmem:[#allocation5 + $0x38] sm:$0xff]  ;;  %v826_v25 = vld [vmem:[%s1379_s14] ss:$0 sm:$0xff] }
 0x4e6   :  { %872 = vmatpush3.bf16.msra.mxu0 %v696_v43 }
 0x4e7   :  { %873 = vmatprep.subr.bf16.mxu0 %v705_v12 }
 0x4ea   :  { %874 = vmatpush3.bf16.msra.mxu0 %v697_v13 }
 0x4eb   :  { %875 = vmatprep.subr.bf16.mxu0 %v706_v14 }
 0x4ee   :  { %876 = vmatpush3.bf16.msra.mxu0 %v698_v15 }
 0x4ef   :  { %877 = vmatprep.subr.bf16.mxu0 %v707_v16 }
 0x4f2   :  { %878 = vmatpush3.bf16.msra.mxu0 %v699_v17 }
 0x4f3   :  { %879 = vmatprep.subr.bf16.mxu0 %v708_v18 }
 0x4f6   :  { %880 = vmatpush3.bf16.msra.mxu0 %v700_v19 }
 0x4f7   :  { %881 = vmatprep.subr.bf16.mxu0 %v709_v20 }
 0x4fa   :  { %882 = vmatpush3.bf16.msra.mxu0 %v701_v21 }
 0x4fb   :  { %883 = vmatprep.subr.bf16.mxu0 %v710_v22 }
 0x4fe   :  { %884 = vmatpush3.bf16.msra.mxu0 %v702_v23 }
 0x501   :  { %828 = vmatmul.mubr.msk.bf16.vlgmr.msra.gmra.mrb[8].mxu0 %vm1213_vm4, %v687_v56 }
 0x5d4   :  { %v885_v24 = vpop.f32.mrb[8].mxu0 }
 0x5d5   :  { %v886_v26 = vpop.f32.mrb[9].mxu0 }
 0x5d6   :  { %v887_v27 = vadd.f32 %v886_v26, %v885_v24  ;;  %v888_v28 = vpop.f32.mrb[10].mxu0 }
 0x5d7   :  { %v889_v29 = vpop.f32.mrb[11].mxu0 }
 0x5d8   :  { %v753_v30 = vadd.f32 %v887_v27, %v826_v25  ;;  %v890_v31 = vadd.f32 %v889_v29, %v888_v28 }
 0x5da   :  { %v759_v32 = vsub.f32 0.0, %v753_v30  ;;  %v756_v33 = vadd.f32 %v890_v31, %v826_v25 }
 0x5dc   :  { %v761_v34 = vmul.f32 1.442695, %v759_v32  ;;  %v760_v35 = vsub.f32 0.0, %v756_v33 }
 0x5de   :  { %987 = vpow2.f32 %v761_v34  ;;  %v763_v36 = vmul.f32 1.442695, %v760_v35 }
 0x5e0   :  { %989 = vpow2.f32 %v763_v36 }
 0x5e8   :  { %v988_v5 = vpop.eup %987 }
 0x5e9   :  { %v765_v37 = vadd.f32 1.0, %v988_v5 }
 0x5ea   :  { %v990_v38 = vpop.eup %989 }
 0x5eb   :  { %v766_v39 = vadd.f32 1.0, %v990_v38  ;;  %991 = vrcp.f32 %v765_v37 }
 0x5ed   :  { %993 = vrcp.f32 %v766_v39 }
 0x5f5   :  { %v992_v40 = vpop.eup %991 }
 0x5f7   :  { %v994_v42 = vpop.eup %993 }
 0x5f8   :  { %v840_v44 = vpack.c.bf16 %v994_v42, %v992_v40 }
 0x5fa   :  { %841 = vst [vmem:[%s1380_s15] sm:$0xff] %v840_v44  }
 0x5fb   :  { %783 = vsyncpa [#allocation8], 1 }
 0x5fc   :  { %784 = vsyncmov [#allocation6] }
 0x5ff   :  { %s785_s22 = vpop.sfrf %784 }
 0x600   :  { %p831_p4 = scmp.ne.s32.totalorder %s785_s22, 0 }
 0x602   :  { %789 = shalt.err (%p831_p4)  }
 0x603   :  { %791 = vsyncmov [#allocation6 + $0x1] }
 0x606   :  { %s792_s24 = vpop.sfrf %791 }
 0x607   :  { %p832_p5 = scmp.ne.s32.totalorder %s792_s24, 0 }
 0x609   :  { %796 = shalt.err (%p832_p5)  }
 0x60a   :  { %798 = vsyncmov [#allocation6 + $0x2] }
 0x60d   :  { %s799_s26 = vpop.sfrf %798 }
 0x60e   :  { %p833_p6 = scmp.ne.s32.totalorder %s799_s26, 0 }
 0x610   :  { %803 = shalt.err (%p833_p6)  }
 0x611   :  { %805 = vsyncmov [#allocation6 + $0x3] }
 0x614   :  { %s806_s27 = vpop.sfrf %805 }
 0x615   :  { %p834_p7 = scmp.ne.s32.totalorder %s806_s27, 0 }
 0x617   :  { %810 = shalt.err (%p834_p7)  }

</bundles_post_ra>
